<compile_context>
chip_gen: v7x
topology: tpu7x:2x2x1
jax: 0.10.0
libtpu: 0.0.40
codegen_flags: <defaults>
</compile_context>

<pallas_src>
import functools

import jax
import jax.numpy as jnp
from jax.experimental import pallas as pl
from jax.experimental.pallas import tpu as pltpu


def _ceil8(n):
    return ((n + 7) // 8) * 8


# --------------------- one-time host-side parameter packing ------------------
def pack_params(params):
    """Transpose, zero-pad to lane-dense blocks, and stack every weight/bias
    into ONE (rows, slab_w) f32 slab (a single weight DMA per grid step).

    Sections (each 8-row aligned, full slab width, zero padded):
      ew0, ew1, state head ew2 (cols [0, S)), dec_w0[state part],
      dec_w0[action part], dw1, dw2, merged price+volume head (cols [S, S+out)),
      then 7 bias rows in one 8-row block.
    """
    f32 = jnp.float32
    hidden = params["enc_w1"].shape[0]
    state_dim = params["enc_w2"].shape[0]
    action_dim = params["dec_w0"].shape[1] - state_dim
    enc_in_dim = params["enc_w0"].shape[1]
    price_dim = params["price_w"].shape[0]
    vol_dim = params["vol_w"].shape[0]
    out_dim = price_dim + vol_dim

    lanes = 128
    max_w = max(hidden, state_dim + out_dim)
    slab_w = ((max(max_w, lanes) + lanes - 1) // lanes) * lanes
    # TODO(synk): for hidden_dim >= ~1024 this VMEM-resident slab no longer fits
    # the v7x 64 MiB VMEM budget; tile the hidden x hidden weights along K/N then.

    k_enc, k_h, k_s, k_a = map(_ceil8, (enc_in_dim, hidden, state_dim, action_dim))

    T = lambda w: jnp.transpose(w).astype(f32)  # PyTorch (out,in) -> (in,out)

    def block(w, rows, col_off=0):
        K, N = w.shape
        z = jnp.zeros((rows, slab_w), f32)
        return z.at[:K, col_off:col_off + N].set(w.astype(f32))

    dw0 = T(params["dec_w0"])                                    # (S+A, hidden)
    head_w = jnp.concatenate([T(params["price_w"]), T(params["vol_w"])], axis=1)

    sections = [
        ("o_ew0",   block(T(params["enc_w0"]), k_enc)),
        ("o_ew1",   block(T(params["enc_w1"]), k_h)),
        ("o_ew2",   block(T(params["enc_w2"]), k_h)),            # state @ cols [0,S)
        ("o_dw0s",  block(dw0[:state_dim], k_s)),
        ("o_dw0a",  block(dw0[state_dim:], k_a)),
        ("o_dw1",   block(T(params["dec_w1"]), k_h)),
        ("o_dw2",   block(T(params["dec_w2"]), k_h)),
        ("o_whead", block(head_w, k_h, col_off=state_dim)),      # pred @ cols [S,S+out)
    ]

    bias = jnp.zeros((8, slab_w), f32)
    bias = bias.at[0, :hidden].set(params["enc_b0"].astype(f32))
    bias = bias.at[1, :hidden].set(params["enc_b1"].astype(f32))
    bias = bias.at[2, :state_dim].set(params["enc_b2"].astype(f32))
    bias = bias.at[3, :hidden].set(params["dec_b0"].astype(f32))
    bias = bias.at[4, :hidden].set(params["dec_b1"].astype(f32))
    bias = bias.at[5, :hidden].set(params["dec_b2"].astype(f32))
    bias = bias.at[6, state_dim:state_dim + price_dim].set(params["price_b"].astype(f32))
    bias = bias.at[6, state_dim + price_dim:state_dim + out_dim].set(
        params["vol_b"].astype(f32))

    layout = {"hidden": hidden, "state_dim": state_dim, "action_dim": action_dim,
              "enc_in_dim": enc_in_dim, "out_dim": out_dim, "slab_w": slab_w,
              "k_enc": k_enc, "k_h": k_h, "k_s": k_s, "k_a": k_a}
    blocks, off = [], 0
    for name, blk in sections:
        layout[name] = off
        off += blk.shape[0]
        blocks.append(blk)
    layout["o_bias"] = off
    blocks.append(bias)
    slab = jnp.concatenate(blocks, axis=0)                        # (rows, slab_w)
    return slab, layout


# ----------------------------- Pallas kernel ---------------------------------
def _make_kernel(L):
    H, S = L["hidden"], L["state_dim"]
    f32 = jnp.float32

    def kernel(enc_in_ref, act_ref, p_ref, out_ref):
        def W(off, rows):                 # full-lane, sublane-aligned weight load
            return p_ref[off:off + rows, :]

        bias = p_ref[L["o_bias"]:L["o_bias"] + 8, :]
        b = lambda r: bias[r:r + 1, :]
        relu = lambda v: jnp.maximum(v, 0.0)
        dot = lambda x, w: jnp.dot(x, w, preferred_element_type=f32)

        x = enc_in_ref[...]               # (TB, k_enc)  cat(obs, prev_s, prev_a)
        a = act_ref[...]                  # (TB, k_a)

        # ---- Encoder: h=ReLU(L0(cat)); h=ReLU(L1(h)); state=L2(h)
        h = relu(dot(x, W(L["o_ew0"], L["k_enc"])) + b(0))
        h = relu(dot(h[:, :H], W(L["o_ew1"], L["k_h"])) + b(1))
        state = dot(h[:, :H], W(L["o_ew2"], L["k_h"])) + b(2)   # lanes [0,S), rest 0

        # ---- Decoder: cat(state, action) @ W0 == two exact split matmuls
        g = relu(dot(state[:, :S], W(L["o_dw0s"], L["k_s"]))
                 + dot(a, W(L["o_dw0a"], L["k_a"])) + b(3))
        g = relu(dot(g[:, :H], W(L["o_dw1"], L["k_h"])) + b(4))
        z = dot(g[:, :H], W(L["o_dw2"], L["k_h"])) + b(5)

        # ---- Merged price+volume head fused with the state output into ONE
        #      lane-dense (TB, slab_w) slab -> single unmasked full-width store.
        out_ref[...] = (state + dot(z[:, :H], W(L["o_whead"], L["k_h"])) + b(6)
                        ).astype(out_ref.dtype)

    return kernel


# --------------------------- per-call forward --------------------------------
def mt_ae_forward(layout, slab, observation, action, prev_state, prev_action):
    L = layout
    f32 = jnp.float32
    B = observation.shape[0]
    S, out_dim, slab_w = L["state_dim"], L["out_dim"], L["slab_w"]

    enc_in = jnp.concatenate(
        [observation, prev_state, prev_action], axis=1).astype(f32)

    # Batch tiling: one big row tile when possible; for large batches force
    # >= 2 "parallel" grid steps so v7x can shard across both TensorCores.
    TB_MAX = 1024
    B_pad = _ceil8(max(B, 8))
    if B_pad >= 256:
        TB = min(TB_MAX, _ceil8((B_pad + 1) // 2))
    else:
        TB = B_pad
    B_pad = ((B_pad + TB - 1) // TB) * TB
    grid = (B_pad // TB,)

    enc_in_p = jnp.pad(enc_in, ((0, B_pad - B), (0, L["k_enc"] - enc_in.shape[1])))
    act_p = jnp.pad(action.astype(f32),
                    ((0, B_pad - B), (0, L["k_a"] - action.shape[1])))

    out = pl.pallas_call(
        _make_kernel(L),
        out_shape=jax.ShapeDtypeStruct((B_pad, slab_w), f32),
        grid=grid,
        in_specs=[
            pl.BlockSpec((TB, L["k_enc"]), lambda i: (i, 0)),
            pl.BlockSpec((TB, L["k_a"]), lambda i: (i, 0)),
            pl.BlockSpec(slab.shape, lambda i: (0, 0)),   # weights stay VMEM-resident
        ],
        out_specs=pl.BlockSpec((TB, slab_w), lambda i: (i, 0)),
        compiler_params=pltpu.CompilerParams(
            dimension_semantics=("parallel",),
            vmem_limit_bytes=32 * 1024 * 1024),
    )(enc_in_p, act_p, slab)

    state = out[:B, :S]
    pred = out[:B, S:S + out_dim]
    return pred, state


# --------------------------- Pure-JAX reference ------------------------------
def reference_forward(params, observation, action, prev_state, prev_action):
    def lin(x, w, b):  # PyTorch Linear semantics
        return x @ w.T + b

    x = jnp.concatenate([observation, prev_state, prev_action], axis=1)
    h = jax.nn.relu(lin(x, params["enc_w0"], params["enc_b0"]))
    h = jax.nn.relu(lin(h, params["enc_w1"], params["enc_b1"]))
    state = lin(h, params["enc_w2"], params["enc_b2"])

    y = jnp.concatenate([state, action], axis=1)
    g = jax.nn.relu(lin(y, params["dec_w0"], params["dec_b0"]))
    g = jax.nn.relu(lin(g, params["dec_w1"], params["dec_b1"]))
    z = lin(g, params["dec_w2"], params["dec_b2"])

    price = lin(z, params["price_w"], params["price_b"])
    vol = lin(z, params["vol_w"], params["vol_b"])
    return jnp.concatenate([price, vol], axis=1), state


# ---------------------------- Deterministic init -----------------------------
def init_params(key, obs_dim, hidden_dim, state_dim, action_dim, output_dims):
    input_dim = obs_dim + state_dim + action_dim  # encoder cat width
    dims = {
        "enc_w0": (hidden_dim, input_dim),  "enc_b0": (hidden_dim,),
        "enc_w1": (hidden_dim, hidden_dim), "enc_b1": (hidden_dim,),
        "enc_w2": (state_dim, hidden_dim),  "enc_b2": (state_dim,),
        "dec_w0": (hidden_dim, state_dim + action_dim), "dec_b0": (hidden_dim,),
        "dec_w1": (hidden_dim, hidden_dim), "dec_b1": (hidden_dim,),
        "dec_w2": (hidden_dim, hidden_dim), "dec_b2": (hidden_dim,),
        "price_w": (output_dims["price"], hidden_dim),
        "price_b": (output_dims["price"],),
        "vol_w": (output_dims["volume"], hidden_dim),
        "vol_b": (output_dims["volume"],),
    }
    params = {}
    keys = jax.random.split(key, len(dims))
    for (name, shape), k in zip(sorted(dims.items()), keys):
        params[name] = (0.1 * jax.random.normal(k, shape)).astype(jnp.float32)
    return params


# ----------------------------------- Main ------------------------------------
if __name__ == "__main__":
    obs_dim, hidden_dim, state_dim, action_dim = 16, 32, 8, 4
    output_dims = {"price": 10, "volume": 12}
    out_dim = output_dims["price"] + output_dims["volume"]

    key = jax.random.PRNGKey(0)
    k_par, k_obs, k_act, k_ps, k_pa = jax.random.split(key, 5)

    params = init_params(k_par, obs_dim, hidden_dim, state_dim, action_dim,
                         output_dims)

    # One-time parameter repacking, hoisted out of the per-call path.
    slab, layout = pack_params(params)
    forward = jax.jit(functools.partial(mt_ae_forward, layout))

    def run_and_check(B, keys):
        ko, ka, ks, kp = keys
        observation = jax.random.normal(ko, (B, obs_dim), dtype=jnp.float32)
        action = jax.random.normal(ka, (B, action_dim), dtype=jnp.float32)
        prev_state = jax.random.normal(ks, (B, state_dim), dtype=jnp.float32)
        prev_action = jax.random.normal(kp, (B, action_dim), dtype=jnp.float32)

        pred, state = forward(slab, observation, action, prev_state, prev_action)
        jax.block_until_ready((pred, state))

        ref_pred, ref_state = reference_forward(params, observation, action,
                                                prev_state, prev_action)
        assert pred.shape == (B, out_dim)
        assert state.shape == (B, state_dim)
        assert jnp.allclose(pred, ref_pred, atol=1e-4, rtol=1e-4)
        assert jnp.allclose(state, ref_state, atol=1e-4, rtol=1e-4)

    # Small batch (single grid step) and a larger batch exercising the
    # multi-step "parallel" grid + batch padding path.
    run_and_check(8, jax.random.split(k_obs, 4))
    run_and_check(300, jax.random.split(k_act, 4))

    print("KERNEL_OK")
</pallas_src>

<mosaic_0001>
module attributes {stable_mosaic.version = 11 : i64} {
  func.func @kernel(%arg0: i32, %arg1: memref<8x32xf32, #tpu.memory_space<vmem>>, %arg2: memref<8x8xf32, #tpu.memory_space<vmem>>, %arg3: memref<216x128xf32, #tpu.memory_space<vmem>>, %arg4: memref<8x128xf32, #tpu.memory_space<vmem>>) attributes {dimension_semantics = [#tpu.dimension_semantics<parallel>], iteration_bounds = array<i64: 1>, scalar_prefetch = 0 : i64, scratch_operands = 0 : i64, tpu.core_type = #tpu.core_type<tc>, window_params = [{transform_indices = @transform_0, window_bounds = array<i64: 8, 32>}, {transform_indices = @transform_1, window_bounds = array<i64: 8, 8>}, {pipeline_mode = #tpu.pipeline_mode<synchronous>, transform_indices = @transform_2, window_bounds = array<i64: 216, 128>}, {transform_indices = @transform_3, window_bounds = array<i64: 8, 128>}]} {
    %c208 = arith.constant 208 : index
    %c0 = arith.constant 0 : index
    %0 = vector.load %arg3[%c208, %c0] : memref<216x128xf32, #tpu.memory_space<vmem>>, vector<8x128xf32>
    %c0_0 = arith.constant 0 : index
    %c0_1 = arith.constant 0 : index
    %1 = vector.load %arg1[%c0_0, %c0_1] : memref<8x32xf32, #tpu.memory_space<vmem>>, vector<8x32xf32>
    %c0_2 = arith.constant 0 : index
    %c0_3 = arith.constant 0 : index
    %2 = vector.load %arg2[%c0_2, %c0_3] : memref<8x8xf32, #tpu.memory_space<vmem>>, vector<8x8xf32>
    %c0_4 = arith.constant 0 : index
    %c0_5 = arith.constant 0 : index
    %3 = vector.load %arg3[%c0_4, %c0_5] : memref<216x128xf32, #tpu.memory_space<vmem>>, vector<32x128xf32>
    %cst = arith.constant dense<0.000000e+00> : vector<8x128xf32>
    %4 = tpu.matmul %1, %3, %cst {dimension_numbers = #tpu.dot_dimension_numbers<[1], [0], [0], [1], [0, 0, 1, 1], [], []>} : vector<8x32xf32>, vector<32x128xf32>, vector<8x128xf32> -> vector<8x128xf32>
    %5 = vector.extract_strided_slice %0 {offsets = [0, 0], sizes = [1, 128], strides = [1, 1]} : vector<8x128xf32> to vector<1x128xf32>
    %6 = vector.broadcast %5 : vector<1x128xf32> to vector<8x128xf32>
    %7 = arith.addf %4, %6 : vector<8x128xf32>
    %cst_6 = arith.constant 0.000000e+00 : f32
    %8 = vector.broadcast %cst_6 : f32 to vector<8x128xf32>
    %9 = arith.maximumf %7, %8 : vector<8x128xf32>
    %10 = vector.extract_strided_slice %9 {offsets = [0, 0], sizes = [8, 32], strides = [1, 1]} : vector<8x128xf32> to vector<8x32xf32>
    %c32 = arith.constant 32 : index
    %c0_7 = arith.constant 0 : index
    %11 = vector.load %arg3[%c32, %c0_7] : memref<216x128xf32, #tpu.memory_space<vmem>>, vector<32x128xf32>
    %cst_8 = arith.constant dense<0.000000e+00> : vector<8x128xf32>
    %12 = tpu.matmul %10, %11, %cst_8 {dimension_numbers = #tpu.dot_dimension_numbers<[1], [0], [0], [1], [0, 0, 1, 1], [], []>} : vector<8x32xf32>, vector<32x128xf32>, vector<8x128xf32> -> vector<8x128xf32>
    %13 = vector.extract_strided_slice %0 {offsets = [1, 0], sizes = [1, 128], strides = [1, 1]} : vector<8x128xf32> to vector<1x128xf32>
    %14 = vector.broadcast %13 : vector<1x128xf32> to vector<8x128xf32>
    %15 = arith.addf %12, %14 : vector<8x128xf32>
    %cst_9 = arith.constant 0.000000e+00 : f32
    %16 = vector.broadcast %cst_9 : f32 to vector<8x128xf32>
    %17 = arith.maximumf %15, %16 : vector<8x128xf32>
    %18 = vector.extract_strided_slice %17 {offsets = [0, 0], sizes = [8, 32], strides = [1, 1]} : vector<8x128xf32> to vector<8x32xf32>
    %c64 = arith.constant 64 : index
    %c0_10 = arith.constant 0 : index
    %19 = vector.load %arg3[%c64, %c0_10] : memref<216x128xf32, #tpu.memory_space<vmem>>, vector<32x128xf32>
    %cst_11 = arith.constant dense<0.000000e+00> : vector<8x128xf32>
    %20 = tpu.matmul %18, %19, %cst_11 {dimension_numbers = #tpu.dot_dimension_numbers<[1], [0], [0], [1], [0, 0, 1, 1], [], []>} : vector<8x32xf32>, vector<32x128xf32>, vector<8x128xf32> -> vector<8x128xf32>
    %21 = vector.extract_strided_slice %0 {offsets = [2, 0], sizes = [1, 128], strides = [1, 1]} : vector<8x128xf32> to vector<1x128xf32>
    %22 = vector.broadcast %21 : vector<1x128xf32> to vector<8x128xf32>
    %23 = arith.addf %20, %22 : vector<8x128xf32>
    %24 = vector.extract_strided_slice %23 {offsets = [0, 0], sizes = [8, 8], strides = [1, 1]} : vector<8x128xf32> to vector<8x8xf32>
    %c96 = arith.constant 96 : index
    %c0_12 = arith.constant 0 : index
    %25 = vector.load %arg3[%c96, %c0_12] : memref<216x128xf32, #tpu.memory_space<vmem>>, vector<8x128xf32>
    %cst_13 = arith.constant dense<0.000000e+00> : vector<8x128xf32>
    %26 = tpu.matmul %24, %25, %cst_13 {dimension_numbers = #tpu.dot_dimension_numbers<[1], [0], [0], [1], [0, 0, 1, 1], [], []>} : vector<8x8xf32>, vector<8x128xf32>, vector<8x128xf32> -> vector<8x128xf32>
    %c104 = arith.constant 104 : index
    %c0_14 = arith.constant 0 : index
    %27 = vector.load %arg3[%c104, %c0_14] : memref<216x128xf32, #tpu.memory_space<vmem>>, vector<8x128xf32>
    %cst_15 = arith.constant dense<0.000000e+00> : vector<8x128xf32>
    %28 = tpu.matmul %2, %27, %cst_15 {dimension_numbers = #tpu.dot_dimension_numbers<[1], [0], [0], [1], [0, 0, 1, 1], [], []>} : vector<8x8xf32>, vector<8x128xf32>, vector<8x128xf32> -> vector<8x128xf32>
    %29 = arith.addf %26, %28 : vector<8x128xf32>
    %30 = vector.extract_strided_slice %0 {offsets = [3, 0], sizes = [1, 128], strides = [1, 1]} : vector<8x128xf32> to vector<1x128xf32>
    %31 = vector.broadcast %30 : vector<1x128xf32> to vector<8x128xf32>
    %32 = arith.addf %29, %31 : vector<8x128xf32>
    %cst_16 = arith.constant 0.000000e+00 : f32
    %33 = vector.broadcast %cst_16 : f32 to vector<8x128xf32>
    %34 = arith.maximumf %32, %33 : vector<8x128xf32>
    %35 = vector.extract_strided_slice %34 {offsets = [0, 0], sizes = [8, 32], strides = [1, 1]} : vector<8x128xf32> to vector<8x32xf32>
    %c112 = arith.constant 112 : index
    %c0_17 = arith.constant 0 : index
    %36 = vector.load %arg3[%c112, %c0_17] : memref<216x128xf32, #tpu.memory_space<vmem>>, vector<32x128xf32>
    %cst_18 = arith.constant dense<0.000000e+00> : vector<8x128xf32>
    %37 = tpu.matmul %35, %36, %cst_18 {dimension_numbers = #tpu.dot_dimension_numbers<[1], [0], [0], [1], [0, 0, 1, 1], [], []>} : vector<8x32xf32>, vector<32x128xf32>, vector<8x128xf32> -> vector<8x128xf32>
    %38 = vector.extract_strided_slice %0 {offsets = [4, 0], sizes = [1, 128], strides = [1, 1]} : vector<8x128xf32> to vector<1x128xf32>
    %39 = vector.broadcast %38 : vector<1x128xf32> to vector<8x128xf32>
    %40 = arith.addf %37, %39 : vector<8x128xf32>
    %cst_19 = arith.constant 0.000000e+00 : f32
    %41 = vector.broadcast %cst_19 : f32 to vector<8x128xf32>
    %42 = arith.maximumf %40, %41 : vector<8x128xf32>
    %43 = vector.extract_strided_slice %42 {offsets = [0, 0], sizes = [8, 32], strides = [1, 1]} : vector<8x128xf32> to vector<8x32xf32>
    %c144 = arith.constant 144 : index
    %c0_20 = arith.constant 0 : index
    %44 = vector.load %arg3[%c144, %c0_20] : memref<216x128xf32, #tpu.memory_space<vmem>>, vector<32x128xf32>
    %cst_21 = arith.constant dense<0.000000e+00> : vector<8x128xf32>
    %45 = tpu.matmul %43, %44, %cst_21 {dimension_numbers = #tpu.dot_dimension_numbers<[1], [0], [0], [1], [0, 0, 1, 1], [], []>} : vector<8x32xf32>, vector<32x128xf32>, vector<8x128xf32> -> vector<8x128xf32>
    %46 = vector.extract_strided_slice %0 {offsets = [5, 0], sizes = [1, 128], strides = [1, 1]} : vector<8x128xf32> to vector<1x128xf32>
    %47 = vector.broadcast %46 : vector<1x128xf32> to vector<8x128xf32>
    %48 = arith.addf %45, %47 : vector<8x128xf32>
    %49 = vector.extract_strided_slice %48 {offsets = [0, 0], sizes = [8, 32], strides = [1, 1]} : vector<8x128xf32> to vector<8x32xf32>
    %c176 = arith.constant 176 : index
    %c0_22 = arith.constant 0 : index
    %50 = vector.load %arg3[%c176, %c0_22] : memref<216x128xf32, #tpu.memory_space<vmem>>, vector<32x128xf32>
    %cst_23 = arith.constant dense<0.000000e+00> : vector<8x128xf32>
    %51 = tpu.matmul %49, %50, %cst_23 {dimension_numbers = #tpu.dot_dimension_numbers<[1], [0], [0], [1], [0, 0, 1, 1], [], []>} : vector<8x32xf32>, vector<32x128xf32>, vector<8x128xf32> -> vector<8x128xf32>
    %52 = arith.addf %23, %51 : vector<8x128xf32>
    %53 = vector.extract_strided_slice %0 {offsets = [6, 0], sizes = [1, 128], strides = [1, 1]} : vector<8x128xf32> to vector<1x128xf32>
    %54 = vector.broadcast %53 : vector<1x128xf32> to vector<8x128xf32>
    %55 = arith.addf %52, %54 : vector<8x128xf32>
    %c0_24 = arith.constant 0 : index
    %c0_25 = arith.constant 0 : index
    %56 = vector.load %arg4[%c0_24, %c0_25] : memref<8x128xf32, #tpu.memory_space<vmem>>, vector<8x128xf32>
    tpu.vector_store %arg4[%c0_24, %c0_25], %55 {strides = array<i32>} : memref<8x128xf32, #tpu.memory_space<vmem>>, vector<8x128xf32>,
    return
  }
  func.func @transform_0(%arg0: i32) -> (i32, i32) {
    %c0_i32 = arith.constant 0 : i32
    %c0_i32_0 = arith.constant 0 : i32
    return %arg0, %c0_i32 : i32, i32
  }
  func.func @transform_1(%arg0: i32) -> (i32, i32) {
    %c0_i32 = arith.constant 0 : i32
    %c0_i32_0 = arith.constant 0 : i32
    return %arg0, %c0_i32 : i32, i32
  }
  func.func @transform_2(%arg0: i32) -> (i32, i32) {
    %c0_i32 = arith.constant 0 : i32
    %c0_i32_0 = arith.constant 0 : i32
    %c0_i32_1 = arith.constant 0 : i32
    return %c0_i32, %c0_i32_0 : i32, i32
  }
  func.func @transform_3(%arg0: i32) -> (i32, i32) {
    %c0_i32 = arith.constant 0 : i32
    %c0_i32_0 = arith.constant 0 : i32
    return %arg0, %c0_i32 : i32, i32
  }
}

</mosaic_0001>

<bundles_post_ra>
// kernel: mt_ae_forward.1
= control target key start
LH: loop header
LB: loop body
LE: loop exit
PB: predicated region body
PF: predicated region fallthrough
CT: control target
= control target key end

     0   :  { %8 = vsyncpa [#allocation3], 0  ;;  %s868_s12 = smov [#allocation2]   ;;  %s971_s0 = inlined_call_operand.vmem [shape: f32[8,32], index: 0, kind: input, shape index: {}]   ;;  %s972_s1 = inlined_call_operand.vmem [shape: f32[8,8], index: 1, kind: input, shape index: {}]   ;;  %s973_s2 = inlined_call_operand.hbm [shape: f32[216,128], index: 2, kind: input, shape index: {}]   ;;  %s974_s3 = inlined_call_operand.vmem [shape: f32[8,128], index: 3, kind: output, shape index: {}]  }
   0x1   :  { %s18_s13 = sshll.u32 %s868_s12, 4  ;;  %s844_s16 = scalar_lea.hbm %s973_s2, 3456  ;;  %s19_s13 = int_to_ptr.vmem [resolvable:$true] %s18_s13 }
   0x2   :  { %p845_p0 = scmp.ne.s32.totalorder %s973_s2, %s844_s16  ;;  %p848_p1 = scmp.lt.u32.totalorder %s844_s16, %s973_s2 }
   0x4   :  { %p850_p2 = pnand %p848_p1, %p845_p0 }
   0x6   :  { %853 = shalt.err (!%p850_p2)
}
   0x7   :  { %s854_s21 = scalar_lea.vmem %s19_s13, 3456  ;;  %p859_p4 = scmp.lt.s32.totalorder %s19_s13, %s19_s13 }
   0x8   :  { %p855_p3 = scmp.ne.s32.totalorder %s19_s13, %s854_s21  ;;  %p860_p5 = scmp.lt.s32.totalorder %s854_s21, %s854_s21 }
   0xa   :  { %p861_p6 = por %p860_p5, %p859_p4 }
   0xc   :  { %p862_p7 = pnand %p861_p6, %p855_p3 }
   0xe   :  { %865 = shalt.err (!%p862_p7)
}
   0xf   :  { %s869_s22 = smov 128   ;;  %s870_s23 = smov 8  }
  0x10   :  { %24 = dma.hbm_to_vmem [thread:$0]  %s973_s2, 3456, %s19_s13, [#allocation3], %s869_s22, %s869_s22, %s870_s23  }
  0x11   :  { %866 = dma.done.wait [#allocation3], 3456  }
  0x12   :  { %867 = vsyncadd [#allocation3], 4294963840  ;;  %v871_v0 = vmov 0.0|0.0   ;;  %vm872_vm0 = vmmov 0   ;;  %v873_v1 = vmov 0.0   ;;  %v31_v2 = vld [vmem:[#allocation2] sm:$0xff]  ;;  %v35_v18 = vlaneseq }
  0x13   :  { %802 = vmatprep.subr.bf16.mxu0 %v871_v0  ;;  %734 = vmatprep.mubr.msk.f32.mxu0 %vm872_vm0, %v873_v1  ;;  %v32_v3 = vld [vmem:[#allocation2 + $0x8] sm:$0xff]  ;;  %v33_v4 = vld [vmem:[#allocation2 + $0x10] sm:$0xff]  ;;  %v34_v6 = vld [vmem:[#allocation2 + $0x18] sm:$0xff]  ;;  %vm39_vm1 = vcmask 261120   ;;  %vm279_vm2 = vcmask 64512  }
  0x14   :  { %808 = vmatprep.subr.bf16.mxu1 %v871_v0  ;;  %745 = vmatprep.mubr.msk.f32.mxu1 %vm872_vm0, %v873_v1  ;;  %v803_v5 = vpack.c.bf16 %v32_v3, %v31_v2  ;;  %v114_v7 = vld [vmem:[#allocation2 + $0x20] sm:$0xff]  ;;  %v115_v8 = vld [vmem:[#allocation2 + $0x28] sm:$0xff]  ;;  %v806_v9 = vpack.c.bf16 %v34_v6, %v33_v4  ;;  %v116_v12 = vld [vmem:[#allocation2 + $0x30] sm:$0xff]  ;;  %v923_v19 = vshrl.u32 %v35_v18, 7 }
  0x15   :  { %v809_v10 = vpack.c.bf16 %v115_v8, %v114_v7  ;;  %v29_v11 = vld [vmem:[%s971_s0] sm:$0xff]  ;;  %v117_v13 = vld [vmem:[#allocation2 + $0x38] sm:$0xff]  ;;  %v197_v16 = vld [vmem:[#allocation2 + $0x48] sm:$0xff] }
  0x16   :  { %804 = vmatpush3.bf16.msra.mxu0 %v803_v5  ;;  %v812_v14 = vpack.c.bf16 %v117_v13, %v116_v12  ;;  %v196_v15 = vld [vmem:[#allocation2 + $0x40] sm:$0xff]  ;;  %v37_v20 = vsub.s32 0, %v923_v19  ;;  %v926_v21 = vld [vmem:[#allocation2 + $0xd0] sm:$0xff]  ;;  %v199_v28 = vld [vmem:[#allocation2 + $0x58] sm:$0xff]  ;;  %v120_v33 = vsub.s32 1, %v923_v19  ;;  %v202_v41 = vsub.s32 2, %v923_v19 }
  0x17   :  { %805 = vmatprep.subr.bf16.mxu0 %v871_v0  ;;  %810 = vmatpush3.bf16.msra.mxu1 %v809_v10  ;;  %v815_v17 = vpack.c.bf16 %v197_v16, %v196_v15  ;;  %v198_v27 = vld [vmem:[#allocation2 + $0x50] sm:$0xff]  ;;  %v278_v30 = vld [vmem:[#allocation2 + $0x68] sm:$0xff]  ;;  %v30_v31 = vld [vmem:[%s972_s1] sm:$0xff]  ;;  %v428_v55 = vsub.s32 3, %v923_v19  ;;  %v438_v6 = vsub.s32 4, %v923_v19  ;;  %v675_v18 = vsub.s32 6, %v923_v19 }
  0x18   :  { %811 = vmatprep.subr.bf16.mxu1 %v871_v0  ;;  %v38_v22 = vrot.slane %v926_v21, %v37_v20  ;;  %v818_v29 = vpack.c.bf16 %v199_v28, %v198_v27  ;;  %v277_v32 = vld [vmem:[#allocation2 + $0x60] sm:$0xff]  ;;  %v121_v34 = vrot.slane %v926_v21, %v120_v33  ;;  %v203_v42 = vrot.slane %v926_v21, %v202_v41  ;;  %v432_v46 = vld [vmem:[#allocation2 + $0x70] sm:$0xff]  ;;  %v433_v47 = vld [vmem:[#allocation2 + $0x78] sm:$0xff] }
  0x19   :  { %v821_v48 = vpack.c.bf16 %v433_v47, %v432_v46  ;;  %v434_v49 = vld [vmem:[#allocation2 + $0x80] sm:$0xff]  ;;  %v435_v50 = vld [vmem:[#allocation2 + $0x88] sm:$0xff]  ;;  %v514_v52 = vld [vmem:[#allocation2 + $0x90] sm:$0xff]  ;;  %v429_v56 = vrot.slane %v926_v21, %v428_v55  ;;  %v439_v7 = vrot.slane %v926_v21, %v438_v6  ;;  %v676_v20 = vrot.slane %v926_v21, %v675_v18 }
  0x1a   :  { %807 = vmatpush3.bf16.msra.mxu0 %v806_v9  ;;  %v824_v51 = vpack.c.bf16 %v435_v50, %v434_v49  ;;  %v515_v53 = vld [vmem:[#allocation2 + $0x98] sm:$0xff]  ;;  %v516_v62 = vld [vmem:[#allocation2 + $0xa0] sm:$0xff]  ;;  %v517_v63 = vld [vmem:[#allocation2 + $0xa8] sm:$0xff] }
  0x1b   :  { %814 = vmatprep.subr.bf16.mxu0 %v871_v0  ;;  %813 = vmatpush3.bf16.msra.mxu1 %v812_v14  ;;  %v827_v54 = vpack.c.bf16 %v515_v53, %v514_v52  ;;  %v830_v2 = vpack.c.bf16 %v517_v63, %v516_v62  ;;  %v595_v3 = vld [vmem:[#allocation2 + $0xb0] sm:$0xff]  ;;  %v596_v4 = vld [vmem:[#allocation2 + $0xb8] sm:$0xff]  ;;  %v598_v12 = vld [vmem:[#allocation2 + $0xc8] sm:$0xff]  ;;  %v520_v14 = vsub.s32 5, %v923_v19 }
  0x1c   :  { %759 = vmatprep.subr.mxu1 %v873_v1  ;;  %v833_v5 = vpack.c.bf16 %v596_v4, %v595_v3 }
  0x1d   :  { %735 = vmatmul.mubr.msk.f32.vlgmr.msra.gmra.mrb[0].mxu0 %vm39_vm1, %v29_v11  ;;  %v521_v15 = vrot.slane %v926_v21, %v520_v14 }
  0x1e   :  { %756 = vmatprep.mubr.msk.f32.mxu0 %vm872_vm0, %v873_v1  ;;  %816 = vmatpush3.bf16.msra.mxu0 %v815_v17 }
  0x1f   :  { %817 = vmatprep.subr.bf16.mxu0 %v871_v0 }
  0x22   :  { %819 = vmatpush3.bf16.msra.mxu0 %v818_v29 }
  0x23   :  { %820 = vmatprep.subr.bf16.mxu0 %v871_v0 }
  0xf0   :  { %v109_v23 = vpop.f32.mrb[0].mxu0 }
  0xf1   :  { %v110_v24 = vadd.f32 %v109_v23, %v38_v22  ;;  %v736_v25 = vpop.f32.mrb[1].mxu0 }
  0xf3   :  { %v113_v26 = vmax.f32 %v110_v24, 0.0 }
  0xf5   :  { %746 = vmatmul.mubr.msk.f32.vlgmr.msra.gmra.mrb[0].mxu1 %vm39_vm1, %v113_v26 }
  0xf6   :  { %761 = vmatprep.mubr.msk.f32.mxu1 %vm872_vm0, %v873_v1  ;;  %760 = vmatpush3.msra.mxu1 %v278_v30 }
  0xf7   :  { %764 = vmatprep.subr.mxu1 %v873_v1 }
  0xf9   :  { %762 = vmatmul.mubr.msk.f32.vlgmr.msra.gmra.mrb[2].mxu1 %vm279_vm2, %v30_v31 }
  0xfa   :  { %765 = vmatpush3.msra.mxu1 %v277_v32  ;;  %766 = vmatprep.mubr.msk.f32.mxu1 %vm872_vm0, %v873_v1 }
  0xfb   :  { %826 = vmatprep.subr.bf16.mxu1 %v871_v0 }
 0x1c8   :  { %v191_v35 = vpop.f32.mrb[0].mxu1 }
 0x1c9   :  { %v192_v36 = vadd.f32 %v191_v35, %v121_v34  ;;  %v747_v37 = vpop.f32.mrb[1].mxu1 }
 0x1cb   :  { %v195_v38 = vmax.f32 %v192_v36, 0.0 }
 0x1cc   :  { %v349_v39 = vpop.f32.mrb[2].mxu1 }
 0x1cd   :  { %757 = vmatmul.mubr.msk.f32.vlgmr.msra.gmra.mrb[2].mxu0 %vm39_vm1, %v195_v38  ;;  %v763_v40 = vpop.f32.mrb[3].mxu1 }
 0x1ce   :  { %777 = vmatprep.mubr.msk.f32.mxu0 %vm872_vm0, %v873_v1  ;;  %822 = vmatpush3.bf16.msra.mxu0 %v821_v48 }
 0x1cf   :  { %823 = vmatprep.subr.bf16.mxu0 %v871_v0 }
 0x1d2   :  { %825 = vmatpush3.bf16.msra.mxu0 %v824_v51 }
 0x1d3   :  { %832 = vmatprep.subr.bf16.mxu0 %v871_v0 }
 0x2a0   :  { %v273_v43 = vpop.f32.mrb[2].mxu0 }
 0x2a1   :  { %v274_v44 = vadd.f32 %v273_v43, %v203_v42  ;;  %v758_v45 = vpop.f32.mrb[3].mxu0 }
 0x2a3   :  { %767 = vmatmul.mubr.msk.f32.vlgmr.msra.gmra.mrb[4].mxu1 %vm279_vm2, %v274_v44 }
 0x2a4   :  { %788 = vmatprep.mubr.msk.f32.mxu1 %vm872_vm0, %v873_v1  ;;  %828 = vmatpush3.bf16.msra.mxu1 %v827_v54 }
 0x2a5   :  { %829 = vmatprep.subr.bf16.mxu1 %v871_v0 }
 0x2a8   :  { %831 = vmatpush3.bf16.msra.mxu1 %v830_v2 }
 0x376   :  { %v422_v57 = vpop.f32.mrb[4].mxu1 }
 0x377   :  { %v423_v58 = vadd.f32 %v422_v57, %v349_v39  ;;  %v768_v59 = vpop.f32.mrb[5].mxu1 }
 0x379   :  { %v430_v60 = vadd.f32 %v429_v56, %v423_v58 }
 0x37b   :  { %v431_v61 = vmax.f32 %v430_v60, 0.0 }
 0x37d   :  { %778 = vmatmul.mubr.msk.f32.vlgmr.msra.gmra.mrb[4].mxu0 %vm39_vm1, %v431_v61 }
 0x37e   :  { %799 = vmatprep.mubr.msk.f32.mxu0 %vm872_vm0, %v873_v1  ;;  %834 = vmatpush3.bf16.msra.mxu0 %v833_v5  ;;  %v597_v1 = vld [vmem:[#allocation2 + $0xc0] sm:$0xff] }
 0x37f   :  { %835 = vmatprep.subr.bf16.mxu0 %v871_v0  ;;  %v836_v13 = vpack.c.bf16 %v598_v12, %v597_v1 }
 0x382   :  { %837 = vmatpush3.bf16.msra.mxu0 %v836_v13 }
 0x450   :  { %v509_v8 = vpop.f32.mrb[4].mxu0 }
 0x451   :  { %v510_v9 = vadd.f32 %v509_v8, %v439_v7  ;;  %v779_v10 = vpop.f32.mrb[5].mxu0 }
 0x453   :  { %v513_v11 = vmax.f32 %v510_v9, 0.0 }
 0x455   :  { %789 = vmatmul.mubr.msk.f32.vlgmr.msra.gmra.mrb[6].mxu1 %vm39_vm1, %v513_v11 }
 0x528   :  { %v591_v16 = vpop.f32.mrb[6].mxu1 }
 0x529   :  { %v592_v0 = vadd.f32 %v591_v16, %v521_v15  ;;  %v790_v17 = vpop.f32.mrb[7].mxu1 }
 0x52b   :  { %800 = vmatmul.mubr.msk.f32.vlgmr.msra.gmra.mrb[6].mxu0 %vm39_vm1, %v592_v0 }
 0x5fe   :  { %v668_v22 = vpop.f32.mrb[6].mxu0 }
 0x5ff   :  { %v672_v23 = vadd.f32 %v668_v22, %v274_v44  ;;  %v801_v24 = vpop.f32.mrb[7].mxu0 }
 0x601   :  { %v677_v25 = vadd.f32 %v676_v20, %v672_v23 }
 0x603   :  { %678 = vst [vmem:[%s974_s3] sm:$0xff] %v677_v25 }
 0x604   :  { %683 = vsyncpa [#allocation3], 1 }

</bundles_post_ra>
